<compile_context>
chip_gen: v6e
topology: v6e:2x2x1
jax: 0.10.0
libtpu: 0.0.40
codegen_flags: <defaults>
</compile_context>

<pallas_src>
import jax
import jax.numpy as jnp
from jax.experimental import pallas as pl
from jax.experimental.pallas import tpu as pltpu


def _round_up(v, m):
    return ((v + m - 1) // m) * m


def _vmem_budget_and_limit():
    """Generation-aware VMEM numbers: (tile-sizing budget, vmem_limit_bytes)."""
    try:
        cap = int(pltpu.get_tpu_info().vmem_capacity_bytes)
    except Exception:
        cap = 64 * 1024 * 1024          # assume the smallest (v7x) VMEM if unknown
    limit = cap // 2                    # 64 MiB on v5e/v6e (128 MiB phys), 32 MiB on v7x
    budget = int(limit * 0.85)          # headroom for compiler scratch / semaphores
    return budget, limit


def _choose_tiles(B, C, S, x_itemsize, w_itemsize, budget):
    """Pick (TB batches per step, spatial tile, single-buffer-weight flag)."""
    sub_x = 16 if x_itemsize < 4 else 8           # sublane padding of the channel dim
    c_pad = _round_up(C, sub_x)

    single_buffer_w = C >= 512
    w_bufs = 1 if single_buffer_w else 2
    sub_w = 16 if w_itemsize < 4 else 8
    fixed = w_bufs * (_round_up(C, sub_w) * _round_up(C, 128)
                      + _round_up(C, sub_w) * 128) * w_itemsize

    avail = max(budget - fixed, 512 * 1024)

    def tile_vmem(tb, ts):
        ts_pad = _round_up(ts, 128)
        io = 4 * tb * c_pad * ts_pad * x_itemsize   # x + out tiles, double-buffered
        tmp = 2 * c_pad * ts_pad * 4                # in-kernel f32 temporaries
        return io + tmp

    # 1) Largest lane-aligned spatial tile that fits VMEM for one batch element.
    if S <= 128 or tile_vmem(1, S) <= avail:
        tile_s = S
    else:
        per_lane = 4 * c_pad * x_itemsize + 2 * c_pad * 4
        tile_s = max(((avail // per_lane) // 128) * 128, 128)
        tile_s = min(tile_s, S)

    # 2) Fold batches into one step when per-step HBM traffic is tiny (<~2 MiB):
    #    each batch's (C, S) slab is contiguous in NCHW, so the DMA stays contiguous.
    TB = 1
    if tile_s == S and B > 1:
        target = 2 * 1024 * 1024
        per_batch = 2 * C * S * x_itemsize
        want = max(1, -(-target // per_batch))
        while want > 1 and tile_vmem(want, S) > avail:
            want -= 1
        TB = max(d for d in range(1, B + 1) if B % d == 0 and d <= want)

    # 3) Guarantee >= 2 grid steps so both v7x TensorCores get work.
    ns = -(-S // tile_s)
    if (B // TB) * ns < 2:
        if B >= 2:
            TB = max(d for d in range(1, B) if B % d == 0)
        elif S > 128:
            tile_s = max(_round_up(-(-S // 2), 128), 128)

    return TB, tile_s, single_buffer_w


def _make_residual_kernel(C, TB, use_mxu):
    """Kernel over one (TB, C, TILE_S) block of the NCHW-as-(B,C,S) tensor."""

    def kernel(x_ref, w_ref, b_ref, o_ref):
        w = w_ref[...]                         # (C, C), native dtype (bf16 stays bf16 on MXU)
        b = b_ref[...].astype(jnp.float32)     # (C, 1) -> broadcasts over lanes

        # TB is a small static Python int -> fully unrolled, static indices.
        for i in range(TB):
            x = x_ref[i]                       # (C, TILE_S), spatial in lanes
            if use_mxu:
                # MXU matmul, f32 accumulation; output lane dim stays TILE_S.
                fx = jnp.dot(w, x, preferred_element_type=jnp.float32)
            else:
                # Tiny C: C fused multiply-adds on the VPU (lane-dense, no MXU waste).
                xf = x.astype(jnp.float32)
                wf = w.astype(jnp.float32)
                fx = jnp.zeros(xf.shape, jnp.float32)
                for ci in range(C):
                    fx = fx + wf[:, ci:ci + 1] * xf[ci:ci + 1, :]

            # Residual: fuse = torch.add, scale = Identity (default configuration).
            o_ref[i] = (fx + b + x.astype(jnp.float32)).astype(o_ref.dtype)

    return kernel


def residual_pointwise(x_nchw, weight, bias):
    """Residual(fn=1x1 conv).forward(x) for NCHW input x (no layout transposes)."""
    B, C, H, W = x_nchw.shape
    assert weight.shape == (C, C) and bias.shape == (C,)
    S = H * W

    # Free reshape (contiguous merge of trailing dims) -- stays in NCHW order.
    x3d = x_nchw.reshape(B, C, S)
    b2d = bias.reshape(C, 1)

    budget, vmem_limit = _vmem_budget_and_limit()
    TB, tile_s, single_w = _choose_tiles(
        B, C, S, x3d.dtype.itemsize, weight.dtype.itemsize, budget)
    nb = B // TB
    ns = pl.cdiv(S, tile_s)                    # partial edge block handled by Pallas

    use_mxu = C >= 8                           # MXU for anything non-tiny (compiler pads K/M)
    kernel = _make_residual_kernel(C, TB, use_mxu)

    # Constant-index weight/bias blocks: single-buffer them when they are large,
    # so a big (C,C) weight does not occupy 2x VMEM.
    const_kwargs = dict(pipeline_mode=pl.Buffered(1)) if single_w else {}

    flops = 2 * B * S * C * C
    bytes_accessed = (2 * B * C * S * x3d.dtype.itemsize
                      + (C * C + C) * weight.dtype.itemsize)

    out3d = pl.pallas_call(
        kernel,
        out_shape=jax.ShapeDtypeStruct((B, C, S), x3d.dtype),
        grid_spec=pltpu.PrefetchScalarGridSpec(
            num_scalar_prefetch=0,
            grid=(nb, ns),
            in_specs=[
                pl.BlockSpec((TB, C, tile_s), lambda b, s: (b, 0, s)),   # x tile (NCHW)
                pl.BlockSpec((C, C), lambda b, s: (0, 0), **const_kwargs),  # weight (resident)
                pl.BlockSpec((C, 1), lambda b, s: (0, 0), **const_kwargs),  # bias (resident)
            ],
            out_specs=pl.BlockSpec((TB, C, tile_s), lambda b, s: (b, 0, s)),
        ),
        compiler_params=pltpu.CompilerParams(
            dimension_semantics=("parallel", "parallel"),
            vmem_limit_bytes=int(vmem_limit),
        ),
        cost_estimate=pl.CostEstimate(
            flops=int(flops),
            transcendentals=0,
            bytes_accessed=int(bytes_accessed),
        ),
    )(x3d, weight, b2d)

    return out3d.reshape(B, C, H, W)           # free reshape back to NCHW


if __name__ == "__main__":
    key = jax.random.PRNGKey(0)
    kx, kw, kb = jax.random.split(key, 3)

    B, C, H, W = 2, 4, 16, 16
    x = jax.random.normal(kx, (B, C, H, W), dtype=jnp.float32)
    weight = jax.random.normal(kw, (C, C), dtype=jnp.float32) * 0.1
    bias = jax.random.normal(kb, (C,), dtype=jnp.float32) * 0.1

    out = residual_pointwise(x, weight, bias)
    out = jax.block_until_ready(out)

    # Pure-JAX reference: fn(x) + x with fn = 1x1 conv, computed in NCHW directly.
    fx_ref = jnp.einsum("oc,bchw->bohw", weight, x)
    ref = fx_ref + bias.reshape(1, C, 1, 1) + x

    assert out.shape == (B, C, H, W)
    assert jnp.allclose(out, ref, atol=1e-5, rtol=1e-5)

    print("KERNEL_OK")
</pallas_src>

<mosaic_0001>
module attributes {stable_mosaic.version = 11 : i64} {
  func.func @kernel(%arg0: i32, %arg1: i32, %arg2: memref<1x4x256xf32, #tpu.memory_space<vmem>>, %arg3: memref<4x4xf32, #tpu.memory_space<vmem>>, %arg4: memref<4x1xf32, #tpu.memory_space<vmem>>, %arg5: memref<1x4x256xf32, #tpu.memory_space<vmem>>) attributes {dimension_semantics = [#tpu.dimension_semantics<parallel>, #tpu.dimension_semantics<parallel>], iteration_bounds = array<i64: 2, 1>, scalar_prefetch = 0 : i64, scratch_operands = 0 : i64, tpu.core_type = #tpu.core_type<tc>, window_params = [{transform_indices = @transform_0, window_bounds = array<i64: 1, 4, 256>}, {pipeline_mode = #tpu.pipeline_mode<synchronous>, transform_indices = @transform_1, window_bounds = array<i64: 4, 4>}, {pipeline_mode = #tpu.pipeline_mode<synchronous>, transform_indices = @transform_2, window_bounds = array<i64: 4, 1>}, {transform_indices = @transform_3, window_bounds = array<i64: 1, 4, 256>}]} {
    %c0 = arith.constant 0 : index
    %c0_0 = arith.constant 0 : index
    %0 = vector.load %arg3[%c0, %c0_0] : memref<4x4xf32, #tpu.memory_space<vmem>>, vector<4x4xf32>
    %c0_1 = arith.constant 0 : index
    %c0_2 = arith.constant 0 : index
    %1 = vector.load %arg4[%c0_1, %c0_2] : memref<4x1xf32, #tpu.memory_space<vmem>>, vector<4x1xf32>
    %c0_3 = arith.constant 0 : index
    %c0_4 = arith.constant 0 : index
    %c0_5 = arith.constant 0 : index
    %2 = vector.load %arg2[%c0_3, %c0_4, %c0_5] : memref<1x4x256xf32, #tpu.memory_space<vmem>>, vector<1x4x256xf32>
    %3 = vector.shape_cast %2 : vector<1x4x256xf32> to vector<4x256xf32>
    %cst = arith.constant 0.000000e+00 : f32
    %4 = vector.broadcast %cst : f32 to vector<4x256xf32>
    %5 = vector.extract_strided_slice %0 {offsets = [0, 0], sizes = [4, 1], strides = [1, 1]} : vector<4x4xf32> to vector<4x1xf32>
    %6 = vector.extract_strided_slice %3 {offsets = [0, 0], sizes = [1, 256], strides = [1, 1]} : vector<4x256xf32> to vector<1x256xf32>
    %7 = vector.broadcast %5 : vector<4x1xf32> to vector<4x256xf32>
    %8 = vector.broadcast %6 : vector<1x256xf32> to vector<4x256xf32>
    %9 = arith.mulf %7, %8 : vector<4x256xf32>
    %10 = arith.addf %4, %9 : vector<4x256xf32>
    %11 = vector.extract_strided_slice %0 {offsets = [0, 1], sizes = [4, 1], strides = [1, 1]} : vector<4x4xf32> to vector<4x1xf32>
    %12 = vector.extract_strided_slice %3 {offsets = [1, 0], sizes = [1, 256], strides = [1, 1]} : vector<4x256xf32> to vector<1x256xf32>
    %13 = vector.broadcast %11 : vector<4x1xf32> to vector<4x256xf32>
    %14 = vector.broadcast %12 : vector<1x256xf32> to vector<4x256xf32>
    %15 = arith.mulf %13, %14 : vector<4x256xf32>
    %16 = arith.addf %10, %15 : vector<4x256xf32>
    %17 = vector.extract_strided_slice %0 {offsets = [0, 2], sizes = [4, 1], strides = [1, 1]} : vector<4x4xf32> to vector<4x1xf32>
    %18 = vector.extract_strided_slice %3 {offsets = [2, 0], sizes = [1, 256], strides = [1, 1]} : vector<4x256xf32> to vector<1x256xf32>
    %19 = vector.broadcast %17 : vector<4x1xf32> to vector<4x256xf32>
    %20 = vector.broadcast %18 : vector<1x256xf32> to vector<4x256xf32>
    %21 = arith.mulf %19, %20 : vector<4x256xf32>
    %22 = arith.addf %16, %21 : vector<4x256xf32>
    %23 = vector.extract_strided_slice %0 {offsets = [0, 3], sizes = [4, 1], strides = [1, 1]} : vector<4x4xf32> to vector<4x1xf32>
    %24 = vector.extract_strided_slice %3 {offsets = [3, 0], sizes = [1, 256], strides = [1, 1]} : vector<4x256xf32> to vector<1x256xf32>
    %25 = vector.broadcast %23 : vector<4x1xf32> to vector<4x256xf32>
    %26 = vector.broadcast %24 : vector<1x256xf32> to vector<4x256xf32>
    %27 = arith.mulf %25, %26 : vector<4x256xf32>
    %28 = arith.addf %22, %27 : vector<4x256xf32>
    %29 = vector.broadcast %1 : vector<4x1xf32> to vector<4x256xf32>
    %30 = arith.addf %28, %29 : vector<4x256xf32>
    %31 = arith.addf %30, %3 : vector<4x256xf32>
    %c0_6 = arith.constant 0 : index
    %c0_7 = arith.constant 0 : index
    %c0_8 = arith.constant 0 : index
    %32 = vector.load %arg5[%c0_6, %c0_7, %c0_8] : memref<1x4x256xf32, #tpu.memory_space<vmem>>, vector<1x4x256xf32>
    %33 = vector.shape_cast %32 : vector<1x4x256xf32> to vector<4x256xf32>
    %34 = vector.shape_cast %31 : vector<4x256xf32> to vector<1x4x256xf32>
    tpu.vector_store %arg5[%c0_6, %c0_7, %c0_8], %34 {strides = array<i32>} : memref<1x4x256xf32, #tpu.memory_space<vmem>>, vector<1x4x256xf32>,
    return
  }
  func.func @transform_0(%arg0: i32, %arg1: i32) -> (i32, i32, i32) {
    %c0_i32 = arith.constant 0 : i32
    %c0_i32_0 = arith.constant 0 : i32
    return %arg0, %c0_i32, %arg1 : i32, i32, i32
  }
  func.func @transform_1(%arg0: i32, %arg1: i32) -> (i32, i32) {
    %c0_i32 = arith.constant 0 : i32
    %c0_i32_0 = arith.constant 0 : i32
    %c0_i32_1 = arith.constant 0 : i32
    return %c0_i32, %c0_i32_0 : i32, i32
  }
  func.func @transform_2(%arg0: i32, %arg1: i32) -> (i32, i32) {
    %c0_i32 = arith.constant 0 : i32
    %c0_i32_0 = arith.constant 0 : i32
    %c0_i32_1 = arith.constant 0 : i32
    return %c0_i32, %c0_i32_0 : i32, i32
  }
  func.func @transform_3(%arg0: i32, %arg1: i32) -> (i32, i32, i32) {
    %c0_i32 = arith.constant 0 : i32
    %c0_i32_0 = arith.constant 0 : i32
    return %arg0, %c0_i32, %arg1 : i32, i32, i32
  }
}

</mosaic_0001>

<bundles_post_ra>
// kernel: tpu_custom_call.1
= control target key start
LH: loop header
LB: loop body
LE: loop exit
PB: predicated region body
PF: predicated region fallthrough
CT: control target
= control target key end

     0   :  { %8 = vsyncpa [#allocation3], 0  ;;  %s803_s0 = inlined_call_operand.hbm [shape: f32[2,4,256], index: 0, kind: input, shape index: {}]   ;;  %s804_s1 = inlined_call_operand.vmem [shape: f32[4,4], index: 1, kind: input, shape index: {}]   ;;  %s805_s2 = inlined_call_operand.vmem [shape: f32[4,1], index: 2, kind: input, shape index: {}]   ;;  %s806_s3 = inlined_call_operand.hbm [shape: f32[2,4,256], index: 3, kind: output, shape index: {}]  }
   0x1   :  { %10 = vsyncpa [#allocation3 + $0x1], 0 }
   0x2   :  { %11 = vsyncpa [#allocation4], 0 }
   0x3   :  { %13 = vsyncpa [#allocation4 + $0x1], 0  ;;  %s659_s12 = smov 0   ;;  %s661_s13 = smov 0  }
   0x4   :  { %s663_s14 = smov 0   ;;  %s665_s15 = smov 0  }
   0x5   :  { %s667_s16 = smov 0   ;;  %s669_s17 = smov 0  }
   0x6 LB: > { %s433_s18 = sadd.s32 4294967295, %s631_s17   ;;  %s434_s19 = sadd.s32 4294967294, %s631_s17   ;;  %s631_s17 = sphi %s669_s17, %s19_s17   ;;  %s627_s16 = sphi %s667_s16, %s818_s16   ;;  %s623_s15 = sphi %s665_s15, %s817_s15   ;;  %s619_s14 = sphi %s663_s14, %s816_s14   ;;  %s615_s13 = sphi %s661_s13, %s815_s13   ;;  %s611_s12 = sphi %s659_s12, %s814_s12  }
   0x7   : > { %s31_s20 = sadd.s32 1, %s627_s16  ;;  %s40_s21 = sadd.s32 1, %s619_s14 }
   0x8   : > { %p33_p0 = scmp.ge.s32.totalorder %s31_s20, 2  ;;  %p47_p1 = scmp.ne.s32.totalorder %s619_s14, %s615_s13 }
   0x9   : > { %p48_p2 = scmp.eq.s32.totalorder %s631_s17, 0  ;;  %p53_p3 = scmp.ne.s32.totalorder %s615_s13, %s611_s12 }
   0xa   : > { %s820_s20 = smov (%p33_p0, %s31_s20), 0  ;;  %p54_p5 = scmp.eq.s32.totalorder %s433_s18, 0 }
   0xb   : > { %p700_p4 = por %p48_p2, %p47_p1  ;;  %s35_s23 = ssub.s32 %s627_s16, %s820_s20 }
   0xc   : > { %p121_p6 = scmp.eq.s32.totalorder %s433_s18, 1  ;;  %p38_p7 = scmp.eq.s32.totalorder %s35_s23, 0 }
   0xd   : > { %p706_p8 = por %p54_p5, %p53_p3  ;;  %p127_p10 = scmp.eq.s32.totalorder %s434_s19, 1 }
   0xe   : > { %p710_p9 = por %p121_p6, %p47_p1  ;;  %p462_p13 = scmp.lt.s32.totalorder %s631_s17, 2 }
   0xf   : > { %s715_s26 = scalar_select %p38_p7, %s619_s14, %s40_s21  }
  0x10   : > { %p717_p11 = por %p127_p10, %p53_p3  ;;  %s153_s28 = sand.u32 1, %s619_s14  }
  0x11   : > { %s437_s29 = sshll.u32 %s153_s28, 3  ;;  %s448_s30 = sshll.u32 %s627_s16, 7 }
  0x12   : > { %s810_s27 = scalar_select %p717_p11, 1, 0 }
  0x13   : > { %s165_s6 = scalar_lea.hbm %s803_s0, %s448_s30  ;;  %s157_s7 = scalar_lea.vmem [#allocation2], %s437_s29 }
  0x14   : > { %s167_s8 = sshll.u32 %s157_s7, 4  ;;  %p730_p0 = pnand %p462_p13, %p700_p4  ;;  %s168_s8 = int_to_ptr.vmem [resolvable:$true] %s167_s8 }
  0x15   : > { %p440_p1 = scmp.ge.s32.totalorder %s631_s17, 1  ;;  %p172_p2 = scmp.lt.s32.totalorder %s631_s17, 3 }
  0x16   : > { %s154_s10 = scalar_lea.sflag [#allocation3], %s153_s28  ;;  %p525_p3 = pneg %p730_p0 }
  0x17   : > { %s536_s11 = scalar_lea.vmem %s168_s8, 128  ;;  %s633_s18 = smov [#allocation2]  }
  0x18   : > { %p537_p5 = scmp.ne.s32.totalorder %s168_s8, %s536_s11  ;;  %s541_s19 = sshll.u32 %s633_s18, 4  ;;  %s542_s19 = int_to_ptr.vmem [resolvable:$false] %s541_s19 }
  0x19   : > { %s543_s21 = scalar_lea.vmem %s542_s19, 256  ;;  %p544_p10 = scmp.lt.s32.totalorder %s168_s8, %s542_s19 }
  0x1a   : > { %p539_p6 = pnand %p537_p5, %p525_p3  ;;  %p545_p12 = scmp.lt.s32.totalorder %s543_s21, %s536_s11 }
  0x1c   : > { %p540_p7 = pneg %p539_p6  ;;  %p546_p4 = por %p545_p12, %p544_p10 }
  0x1e   : > { %p547_p13 = pnand %p546_p4, %p540_p7 }
  0x20   : > { %550 = shalt.err (!%p547_p13)
}
  0x21   : > { %457 = dma.hbm_to_vmem [thread:$0]  (!%p730_p0), %s165_s6, 128, %s168_s8, %s154_s10  }
  0x22   : > { %p173_p11 = pnand %p440_p1, %p172_p2 }
  0x23   : > { %s745_s22 = sand.u32 (!%p173_p11), 1, %s615_s13  }
  0x24   : > { %176 = sbr.rel (%p173_p11) target bundleno = 200 (0xc8), region = 32  ;;  %s441_s23 = sshll.u32 (!%p173_p11), %s745_s22, 3 }
  0x25   : > { %s179_s28 = scalar_lea.sflag (!%p173_p11), [#allocation3], %s745_s22  ;;  %s182_s29 = scalar_lea.vmem (!%p173_p11), [#allocation2], %s441_s23 }
  0x29   : > { %602 = dma.done.wait (%p706_p8), %s179_s28, 128  }
  0x2a   : > { %604 = vsyncadd (%p706_p8), %s179_s28, 4294967168  ;;  %v634_v0 = vmov 0   ;;  %v635_v1 = vmov 2   ;;  %v207_v2 = vld [vmem:[%s804_s1] sm:$0xf]  ;;  %v636_v3 = vmov 1   ;;  %v216_v6 = vlaneseq }
  0x2b   : > { %516 = vset.pattern.permute.xlu0 %v634_v0  ;;  %518 = vset.pattern.permute.xlu1 %v635_v1  ;;  %v637_v4 = vmov 3   ;;  %v208_v5 = vld [vmem:[%s805_s2] sm:$0xf]  ;;  %s449_s24 = sshll.u32 %s623_s15, 7  ;;  %s204_s7 = scalar_lea.vmem [#allocation5], %s441_s23 }
  0x2c   : > { %212 = vperm.xlu0 %516, %v207_v2   ;;  %265 = vperm.xlu1 %518, %v207_v2   ;;  %v217_v7 = vshrl.u32 %v216_v6, 7  ;;  %v209_v12 = vld [vmem:[%s182_s29] sm:$0xff]  ;;  %s349_s8 = sshll.u32 %s204_s7, 4  ;;  %s347_s11 = scalar_lea.hbm %s806_s3, %s449_s24  ;;  %s350_s8 = int_to_ptr.vmem [resolvable:$true] %s349_s8 }
  0x2d   : > { %v323_v50 = vcombine.high %v209_v12, %v209_v12  ;;  %s333_s18 = scalar_lea.sflag [#allocation4], %s745_s22  ;;  %s551_s19 = scalar_lea.vmem %s350_s8, 128 }
  0x2e   : > { %v218_v8 = vsub.s32 0, %v217_v7  ;;  %v222_v9 = vsub.s32 4, %v217_v7  ;;  %v244_v10 = vsub.s32 1, %v217_v7  ;;  %v248_v11 = vsub.s32 5, %v217_v7  ;;  %p552_p8 = scmp.ne.s32.totalorder %s350_s8, %s551_s19  ;;  %s638_s21 = smov [#allocation5]  }
  0x2f   : > { %v270_v13 = vsub.s32 2, %v217_v7  ;;  %v274_v14 = vsub.s32 6, %v217_v7  ;;  %v296_v15 = vsub.s32 3, %v217_v7  ;;  %v300_v16 = vsub.s32 7, %v217_v7  ;;  %s555_s15 = sshll.u32 %s638_s21, 4  ;;  %s556_s15 = int_to_ptr.vmem [resolvable:$false] %s555_s15 }
  0x30   : > { %517 = vset.pattern.permute.xlu0 %v636_v3  ;;  %519 = vset.pattern.permute.xlu1 %v637_v4  ;;  %v219_v17 = vrot.slane %v209_v12, %v218_v8  ;;  %v223_v18 = vrot.slane %v209_v12, %v222_v9  ;;  %v245_v19 = vrot.slane %v209_v12, %v244_v10  ;;  %p553_p11 = pnand %p552_p8, %p710_p9  ;;  %s557_s23 = scalar_lea.vmem %s556_s15, 256 }
  0x31   : > { %239 = vperm.xlu0 %517, %v207_v2   ;;  %291 = vperm.xlu1 %519, %v207_v2   ;;  %v249_v20 = vrot.slane %v209_v12, %v248_v11  ;;  %v271_v21 = vrot.slane %v209_v12, %v270_v13  ;;  %v275_v22 = vrot.slane %v209_v12, %v274_v14  ;;  %p558_p0 = scmp.lt.s32.totalorder %s350_s8, %s556_s15  ;;  %p559_p1 = scmp.lt.s32.totalorder %s557_s23, %s551_s19 }
  0x32   : > { %v297_v25 = vrot.slane %v209_v12, %v296_v15  ;;  %v301_v26 = vrot.slane %v209_v12, %v300_v16  ;;  %v229_v27 = vrot.slane %v219_v17, %v218_v8  ;;  %v233_v28 = vrot.slane %v223_v18, %v218_v8  ;;  %p554_p12 = pneg %p553_p11 }
  0x33   : > { %v255_v29 = vrot.slane %v245_v19, %v244_v10  ;;  %v259_v30 = vrot.slane %v249_v20, %v244_v10  ;;  %v281_v31 = vrot.slane %v271_v21, %v270_v13  ;;  %v285_v32 = vrot.slane %v275_v22, %v270_v13  ;;  %p560_p2 = por %p559_p1, %p558_p0 }
  0x34   : > { %v307_v33 = vrot.slane %v297_v25, %v296_v15  ;;  %v311_v34 = vrot.slane %v301_v26, %v296_v15 }
  0x35   : > { %520 = vset.pattern.permute.xlu1 %v634_v0  ;;  %521 = vset.pattern.permute.xlu0 %v634_v0  ;;  %p561_p3 = pnand %p560_p2, %p554_p12 }
  0x36   : > { %318 = vperm.xlu1 %520, %v208_v5  }
  0xa7   : > { %v213_v23 = vpop.permute.xlu0 %212  ;;  %v266_v24 = vpop.permute.xlu1 %265 }
  0xa8   : > { %v234_v37 = vmul.f32 %v229_v27, %v213_v23  ;;  %v235_v38 = vmul.f32 %v233_v28, %v213_v23  ;;  %v286_v41 = vmul.f32 %v281_v31, %v266_v24  ;;  %v287_v42 = vmul.f32 %v285_v32, %v266_v24 }
  0xac   : > { %v240_v35 = vpop.permute.xlu0 %239  ;;  %v292_v36 = vpop.permute.xlu1 %291 }
  0xad   : > { %v260_v39 = vmul.f32 %v255_v29, %v240_v35  ;;  %v261_v40 = vmul.f32 %v259_v30, %v240_v35  ;;  %v312_v45 = vmul.f32 %v307_v33, %v292_v36  ;;  %v313_v46 = vmul.f32 %v311_v34, %v292_v36 }
  0xaf   : > { %v262_v43 = vadd.f32 %v260_v39, %v234_v37  ;;  %v263_v44 = vadd.f32 %v261_v40, %v235_v38 }
  0xb1   : > { %v288_v47 = vadd.f32 %v286_v41, %v262_v43  ;;  %v289_v48 = vadd.f32 %v287_v42, %v263_v44  ;;  %v319_v49 = vpop.permute.xlu1 %318 }
  0xb3   : > { %v314_v51 = vadd.f32 %v312_v45, %v288_v47  ;;  %v315_v52 = vadd.f32 %v313_v46, %v289_v48 }
  0xb5   : > { %v321_v53 = vadd.f32 %v319_v49, %v314_v51  ;;  %v322_v54 = vadd.f32 %v319_v49, %v315_v52 }
  0xb7   : > { %v325_v55 = vadd.f32 %v321_v53, %v209_v12  ;;  %v326_v56 = vadd.f32 %v323_v50, %v322_v54 }
  0xb9   : > { %v329_v57 = vcombine.low %v325_v55, %v326_v56 }
  0xbb   : > { %331 = vst [vmem:[%s204_s7] sm:$0xff] %v329_v57 }
  0xbc   : > { %564 = shalt.err (!%p561_p3)
}
  0xbd   : > { %s565_s28 = scalar_lea.hbm %s347_s11, 128  ;;  %s569_s30 = scalar_lea.hbm %s806_s3, 256 }
  0xbe   : > { %p566_p5 = scmp.ne.s32.totalorder %s347_s11, %s565_s28  ;;  %p570_p10 = scmp.lt.s32.totalorder %s347_s11, %s806_s3 }
  0xbf   : > { %p571_p4 = scmp.lt.s32.totalorder %s569_s30, %s565_s28 }
  0xc0   : > { %p567_p6 = pnand %p566_p5, %p710_p9 }
  0xc1   : > { %p572_p13 = por %p571_p4, %p570_p10 }
  0xc2   : > { %p568_p7 = pneg %p567_p6 }
  0xc4   : > { %p573_p8 = pnand %p572_p13, %p568_p7 }
  0xc6   : > { %576 = shalt.err (!%p573_p8)
}
  0xc7   : > { %452 = dma.vmem_to_hbm [thread:$0]  (%p710_p9), %s350_s8, 128, %s347_s11, %s333_s18  }
  0xc8 PF: > { %s361_s6 = sand.u32 1, %s611_s12   ;;  %p812_p11 = scmp.ne.s32.totalorder %s810_s27, 0 }
  0xc9   : > { %p813_p12 = scmp.ge.s32.totalorder %s631_s17, 2  ;;  %s362_s24 = scalar_lea.sflag [#allocation4], %s361_s6 }
  0xcb   : > { %p459_p0 = pnand %p813_p12, %p812_p11 }
  0xcd   : > { %p460_p1 = pneg %p459_p0 }
  0xcf   : > { %606 = dma.done.wait (%p460_p1), %s362_s24, 128  }
  0xd0   : > { %608 = vsyncadd (%p460_p1), %s362_s24, 4294967168  ;;  %s19_s17 = sadd.s32 1, %s631_s17   ;;  %s814_s12 = smov %s615_s13 }
  0xd1   : > { %p16_p2 = scmp.ge.s32.totalorder %s19_s17, 4   ;;  %s815_s13 = smov %s619_s14 }
  0xd2   : > { %s816_s14 = smov %s715_s26  ;;  %s817_s15 = smov %s627_s16 }
  0xd3   : > { %s818_s16 = smov %s820_s20  ;;  %18 = sbr.rel (!%p16_p2) target bundleno = 6 (0x6), region = 77 }
  0xd8   :  { %367 = vsyncpa [#allocation3], 1 }
  0xd9   :  { %369 = vsyncpa [#allocation3 + $0x1], 1 }
  0xda   :  { %370 = vsyncpa [#allocation4], 1 }
  0xdb   :  { %372 = vsyncpa [#allocation4 + $0x1], 1 }

</bundles_post_ra>
